<compile_context>
chip_gen: v5e
topology: v5e:2x2
jax: 0.10.0
libtpu: 0.0.40
codegen_flags: <defaults>
</compile_context>

<pallas_src>
import re

import jax
import jax.numpy as jnp
from jax.experimental import pallas as pl
from jax.experimental.pallas import tpu as pltpu

LANES = 128


def _mixture_kernel(p_ref, x_ref, o_ref):
    # p_ref: (1,) float32 parameter in SMEM.
    # x_ref / o_ref: (BM, 128) VMEM tiles.
    x = x_ref[...]
    p = p_ref[0].astype(x.dtype)  # single scalar cast per step, hidden under DMA
    o_ref[...] = jnp.where(x >= 0, x, p * x)


def _mixture_jnp(x, p32):
    """Fused-XLA fallback (1x HBM traffic) for lane-ragged sizes."""
    return jnp.where(x >= 0, x, p32[0].astype(x.dtype) * x)


def _tpu_generation():
    try:
        kind = jax.devices()[0].device_kind.lower()
    except Exception:
        return 0
    m = re.search(r"(\d+)", kind)
    return int(m.group(1)) if m else 0


def _default_block_m(itemsize, generation):
    # Per-tile target bytes: 2 MiB on v5e/older, 4 MiB on v6e/v7x/unknown-new.
    tile_bytes = (4 << 20) if generation >= 6 else (2 << 20)
    return max(8, tile_bytes // (LANES * int(itemsize)))


def mixture_forward(x, p, *, block_m=None, donate_x=False):
    """Forward pass of Mixture: p*x + (1-p)*relu(x).

    x: float array of any shape.  p: scalar / shape-(1,) parameter.
    donate_x: set True only when the caller can donate x's buffer.
    """
    orig_shape = x.shape
    dtype = x.dtype
    total = x.size
    p32 = jnp.asarray(p, jnp.float32).reshape((1,))

    if total == 0:
        return x

    if total % LANES != 0:
        # Lane-ragged: fused XLA elementwise is the cheapest correct path.
        # TODO(synk): a manual-DMA (pl.ANY) kernel could keep ragged shapes in
        # Pallas with no extra copies if this path ever becomes hot.
        return _mixture_jnp(x, p32)

    m = total // LANES
    x2d = x.reshape(m, LANES)  # contiguous reshape: no copy

    gen = _tpu_generation()
    if block_m is None:
        block_m = _default_block_m(dtype.itemsize, gen)
    bm = min(block_m, m)        # multiple of 8, or == m (full dim) -> always legal
    grid_m = pl.cdiv(m, bm)     # partial last block handled by Pallas (elementwise-safe)

    if gen >= 7:
        # v7x: 2 TensorCores per chip; one TC cannot saturate chip HBM.
        dim_sem = (pltpu.CORE_PARALLEL,)
    else:
        dim_sem = ("parallel",)

    cost = pl.CostEstimate(
        flops=2 * total,  # cmp + mul/select per element
        transcendentals=0,
        bytes_accessed=2 * total * dtype.itemsize,
    )

    out2d = pl.pallas_call(
        _mixture_kernel,
        out_shape=jax.ShapeDtypeStruct((m, LANES), dtype),
        grid_spec=pltpu.PrefetchScalarGridSpec(
            num_scalar_prefetch=0,
            grid=(grid_m,),
            in_specs=[
                pl.BlockSpec(memory_space=pltpu.SMEM),         # p (f32 scalar)
                pl.BlockSpec((bm, LANES), lambda i: (i, 0)),   # x tile
            ],
            out_specs=pl.BlockSpec((bm, LANES), lambda i: (i, 0)),
        ),
        compiler_params=pltpu.CompilerParams(dimension_semantics=dim_sem),
        cost_estimate=cost,
        input_output_aliases=({1: 0} if donate_x else {}),
    )(p32, x2d)

    return out2d.reshape(orig_shape)


def _reference(x, p):
    # Literal PyTorch formula: p * x + (1 - p) * relu(x).
    return p[0] * x + (1.0 - p[0]) * jnp.maximum(x, 0.0)


if __name__ == "__main__":
    key = jax.random.PRNGKey(0)

    # Small NCHW activation consistent with typical use of the module.
    x = jax.random.normal(key, (2, 4, 16, 16), dtype=jnp.float32)

    # Deterministic parameter init matching nn.Parameter(torch.tensor([0.0])).
    p0 = jnp.array([0.0], dtype=jnp.float32)
    out0 = jax.block_until_ready(mixture_forward(x, p0))
    assert out0.shape == x.shape and out0.dtype == x.dtype
    assert jnp.allclose(out0, _reference(x, p0), atol=1e-6), "mismatch (p=0)"

    # Non-trivial p.
    p1 = jnp.array([0.3], dtype=jnp.float32)
    out1 = jax.block_until_ready(mixture_forward(x, p1))
    assert jnp.allclose(out1, _reference(x, p1), atol=1e-6), "mismatch (p=0.3)"

    # bf16 activations: p stays f32 in SMEM, cast happens in-kernel.
    xb = jax.random.normal(jax.random.PRNGKey(2), (2, 4, 16, 16), dtype=jnp.bfloat16)
    outb = jax.block_until_ready(mixture_forward(xb, p1))
    assert outb.dtype == jnp.bfloat16 and outb.shape == xb.shape
    ref_b = _reference(xb.astype(jnp.float32), p1)
    assert jnp.allclose(outb.astype(jnp.float32), ref_b, atol=5e-2, rtol=5e-2), "mismatch (bf16)"

    # Lane-ragged shape (total % 128 != 0): fused-XLA fallback path.
    x2 = jax.random.normal(jax.random.PRNGKey(1), (2, 3, 7, 5), dtype=jnp.float32)
    out2 = jax.block_until_ready(mixture_forward(x2, p1))
    assert jnp.allclose(out2, _reference(x2, p1), atol=1e-6), "mismatch (ragged)"

    print("KERNEL_OK")
</pallas_src>

<mosaic_0001>
module attributes {stable_mosaic.version = 11 : i64} {
  func.func @_mixture_kernel(%arg0: i32, %arg1: memref<1xf32, #tpu.memory_space<smem>>, %arg2: memref<16x128xf32, #tpu.memory_space<vmem>>, %arg3: memref<16x128xf32, #tpu.memory_space<vmem>>) attributes {dimension_semantics = [#tpu.dimension_semantics<parallel>], iteration_bounds = array<i64: 1>, scalar_prefetch = 0 : i64, scratch_operands = 0 : i64, tpu.core_type = #tpu.core_type<tc>, window_params = [{transform_indices = @transform_0, window_bounds = array<i64: 1>}, {transform_indices = @transform_1, window_bounds = array<i64: 16, 128>}, {transform_indices = @transform_2, window_bounds = array<i64: 16, 128>}]} {
    %c0 = arith.constant 0 : index
    %c0_0 = arith.constant 0 : index
    %0 = vector.load %arg2[%c0, %c0_0] : memref<16x128xf32, #tpu.memory_space<vmem>>, vector<16x128xf32>
    %c0_1 = arith.constant 0 : index
    %1 = memref.load %arg1[%c0_1] : memref<1xf32, #tpu.memory_space<smem>>
    %cst = arith.constant 0.000000e+00 : f32
    %2 = vector.broadcast %cst : f32 to vector<16x128xf32>
    %3 = arith.cmpf oge, %0, %2 : vector<16x128xf32>
    %4 = vector.broadcast %1 : f32 to vector<16x128xf32>
    %5 = arith.mulf %4, %0 : vector<16x128xf32>
    %6 = arith.select %3, %0, %5 : vector<16x128xi1>, vector<16x128xf32>
    %c0_2 = arith.constant 0 : index
    %c0_3 = arith.constant 0 : index
    %7 = vector.load %arg3[%c0_2, %c0_3] : memref<16x128xf32, #tpu.memory_space<vmem>>, vector<16x128xf32>
    tpu.vector_store %arg3[%c0_2, %c0_3], %6 {strides = array<i32>} : memref<16x128xf32, #tpu.memory_space<vmem>>, vector<16x128xf32>,
    return
  }
  func.func @transform_0(%arg0: i32) -> i32 {
    %c0_i32 = arith.constant 0 : i32
    %c0_i32_0 = arith.constant 0 : i32
    return %c0_i32 : i32
  }
  func.func @transform_1(%arg0: i32) -> (i32, i32) {
    %c0_i32 = arith.constant 0 : i32
    %c0_i32_0 = arith.constant 0 : i32
    return %arg0, %c0_i32 : i32, i32
  }
  func.func @transform_2(%arg0: i32) -> (i32, i32) {
    %c0_i32 = arith.constant 0 : i32
    %c0_i32_0 = arith.constant 0 : i32
    return %arg0, %c0_i32 : i32, i32
  }
}

</mosaic_0001>

<bundles_post_ra>
// kernel: tpu_custom_call.1
= control target key start
LH: loop header
LB: loop body
LE: loop exit
PB: predicated region body
PF: predicated region fallthrough
CT: control target
= control target key end

     0   :  { %8 = vsyncpa [#allocation4], 0  ;;  %s144_s0 = inlined_call_operand.<no memory space> [shape: f32[1], index: 0, kind: input, shape index: {}]   ;;  %s145_s1 = inlined_call_operand.hbm [shape: f32[16,128], index: 1, kind: input, shape index: {}]   ;;  %s146_s2 = inlined_call_operand.hbm [shape: f32[16,128], index: 2, kind: output, shape index: {}]  }
   0x1   :  { %9 = vsyncpa [#allocation5], 0  ;;  %s16_s11 = sshll.u32 %s145_s1, 4  ;;  %s116_s12 = smov [#allocation3]   ;;  %s17_s11 = int_to_ptr.hbm [resolvable:$true] %s16_s11 }
   0x2   :  { %s18_s13 = sshll.u32 %s116_s12, 4  ;;  %s117_s14 = smov 128   ;;  %s19_s13 = int_to_ptr.vmem [resolvable:$true] %s18_s13 }
   0x3   :  { %s118_s15 = smov 8  }
   0x4   :  { %24 = dma.hbm_to_vmem [thread:$0]  %s17_s11, 256, %s19_s13, [#allocation4], %s117_s14, %s117_s14, %s118_s15  }
   0x5   :  { %112 = dma.done.wait [#allocation4], 256  }
   0x6   :  { %113 = vsyncadd [#allocation4], 4294967040  ;;  %v34_v0 = vstv %s144_s0  ;;  %v29_v1 = vld [vmem:[#allocation3] sm:$0xff]  ;;  %v30_v2 = vld [vmem:[#allocation3 + $0x8] sm:$0xff]  ;;  %s119_s18 = smov [#allocation6]   ;;  %s47_s1 = sshll.u32 %s146_s2, 4  ;;  %s48_s1 = int_to_ptr.hbm [resolvable:$true] %s47_s1 }
   0x7   :  { %s45_s19 = sshll.u32 %s119_s18, 4  ;;  %vm32_vm0 = vcmp.ge.f32.partialorder %v29_v1, 0.0  ;;  %v35_v3 = vmul.f32 %v34_v0, %v29_v1  ;;  %vm33_vm1 = vcmp.ge.f32.partialorder %v30_v2, 0.0  ;;  %v36_v4 = vmul.f32 %v34_v0, %v30_v2  ;;  %s46_s19 = int_to_ptr.vmem [resolvable:$true] %s45_s19 }
   0x9   :  { %v37_v5 = vsel %vm32_vm0, %v29_v1, %v35_v3  ;;  %v38_v6 = vsel %vm33_vm1, %v30_v2, %v36_v4 }
   0xa   :  { %39 = vst [vmem:[#allocation6] sm:$0xff] %v37_v5 }
   0xb   :  { %40 = vst [vmem:[#allocation6 + $0x8] sm:$0xff] %v38_v6 }
   0xc   :  { %53 = dma.vmem_to_hbm [thread:$0]  %s46_s19, 256, %s48_s1, [#allocation5], %s117_s14, %s117_s14, %s118_s15  }
   0xd   :  { %114 = dma.done.wait [#allocation5], 256  }
   0xe   :  { %115 = vsyncadd [#allocation5], 4294967040 }
   0xf   :  { %58 = vsyncpa [#allocation4], 1 }
  0x10   :  { %59 = vsyncpa [#allocation5], 1 }

</bundles_post_ra>
